<compile_context>
chip_gen: v5e
topology: v5e:2x2
jax: 0.10.0
libtpu: 0.0.40
codegen_flags: <defaults>
</compile_context>

<pallas_src>
import functools

import jax
import jax.numpy as jnp
from jax import lax
from jax.experimental import pallas as pl
from jax.experimental.pallas import tpu as pltpu  # noqa: F401  (TPU backend)

# "small" config from the module
N_EMBED = 32
BLOCK_SIZE = 8
N_HEAD = 4
HEAD_SIZE = N_EMBED // N_HEAD
LN_EPS = 1e-5
NEG_INF = -1e30  # large finite negative; avoids NaN risk of -inf - -inf


def _layernorm(x, w, b):
    # PyTorch LayerNorm: biased variance over last dim.  w, b: (1, C) broadcast.
    mu = jnp.mean(x, axis=-1, keepdims=True)
    var = jnp.mean((x - mu) * (x - mu), axis=-1, keepdims=True)
    return (x - mu) * lax.rsqrt(var + LN_EPS) * w + b


def block_kernel(x_ref,
                 ln1_w_ref, ln1_b_ref,
                 wqkv_ref,            # (C, 3C) bf16  [Wq | Wk | Wv]
                 wproj_ref,           # (C, C)  bf16
                 bproj_ref,           # (1, C)  f32
                 ln2_w_ref, ln2_b_ref,
                 w1_ref, b1_ref, w2_ref, b2_ref,
                 o_ref,
                 *, batch, seq):
    H, HS, C = N_HEAD, HEAD_SIZE, N_EMBED
    M = batch * seq                                   # fused batch*time rows

    x = x_ref[...].astype(jnp.float32)                # (M, C)

    # ---------- x = x + sa(ln1(x)) ----------
    h1 = _layernorm(x, ln1_w_ref[...], ln1_b_ref[...])              # (M, C) f32

    # Fused QKV projection: one (M,32)x(32,96) bf16 matmul, f32 accumulation.
    qkv = jnp.dot(h1.astype(jnp.bfloat16), wqkv_ref[...],
                  preferred_element_type=jnp.float32)               # (M, 3C)

    # Contiguous 32-wide lane slices (offsets 0 / 32 / 64).
    # NOTE: reference scales by C**-0.5 with C = n_embed (not head_size) --
    # intentional, matches gpt-mini; fold the scale into q (cheaper than
    # scaling the (.., T, T) scores).
    scale = C ** (-0.5)
    q = qkv[:, 0 * C:1 * C] * scale                                  # (M, C)
    k = qkv[:, 1 * C:2 * C]
    v = qkv[:, 2 * C:3 * C]

    # Relayout (M, C) = (B*T, H*hs) -> (H*B, T, hs), head-major batch axis.
    # Done with lane slices + leading-dim reshapes + axis-0 concat only
    # (no minor-dim 4-D transposes), cast to bf16 for the MXU.
    def to_heads(z):
        parts = [z[:, h * HS:(h + 1) * HS].reshape(batch, seq, HS)
                 for h in range(H)]
        return jnp.concatenate(parts, axis=0).astype(jnp.bfloat16)  # (H*B,T,hs)

    qh, kh, vh = to_heads(q), to_heads(k), to_heads(v)

    # Scores per (head, batch): (H*B, T, T).  Batch is NOT folded into the
    # score matrix, so there is no B^2 waste and mask is a static (T, T).
    s = jnp.einsum('bqd,bkd->bqk', qh, kh,
                   preferred_element_type=jnp.float32)               # (H*B,T,T)

    ri = lax.broadcasted_iota(jnp.int32, (seq, seq), 0)
    ci = lax.broadcasted_iota(jnp.int32, (seq, seq), 1)
    causal = ci <= ri                                                # (T, T)
    s = jnp.where(causal[None], s, NEG_INF)

    # Softmax over keys; reciprocal on the EUP (approx) instead of a divide.
    m = jnp.max(s, axis=-1, keepdims=True)
    p = jnp.exp(s - m)
    denom = jnp.sum(p, axis=-1, keepdims=True)
    p = p * pl.reciprocal(denom, approx=True)
    # dropout(p) -> identity (eval mode)

    o = jnp.einsum('bqk,bkd->bqd', p.astype(jnp.bfloat16), vh,
                   preferred_element_type=jnp.float32)               # (H*B,T,hs)

    # Head-concat relayout: (H*B, T, hs) -> (M, H*hs) = (M, C), then ONE
    # (M,32)x(32,32) output-projection matmul (K=32, no cross-head sum).
    o_parts = [o[h * batch:(h + 1) * batch].reshape(M, HS) for h in range(H)]
    o_cat = jnp.concatenate(o_parts, axis=-1)                        # (M, C)

    sa = jnp.dot(o_cat.astype(jnp.bfloat16), wproj_ref[...],
                 preferred_element_type=jnp.float32) + bproj_ref[...]
    # dropout(sa) -> identity (eval mode)
    x1 = x + sa

    # ---------- x = x + ffwd(ln2(x)) ----------
    h2 = _layernorm(x1, ln2_w_ref[...], ln2_b_ref[...])              # (M, C)
    f = jnp.dot(h2.astype(jnp.bfloat16), w1_ref[...],
                preferred_element_type=jnp.float32) + b1_ref[...]    # (M, 4C)
    f = jnp.maximum(f, 0.0)                                          # ReLU
    f = jnp.dot(f.astype(jnp.bfloat16), w2_ref[...],
                preferred_element_type=jnp.float32) + b2_ref[...]    # (M, C)
    # dropout(f) -> identity (eval mode)

    o_ref[...] = (x1 + f).astype(o_ref.dtype)


def block_forward(x, params):
    """x: (B, T, C) float32.  params: dict (see init_params for layout)."""
    B, T, C = x.shape
    assert C == N_EMBED and T <= BLOCK_SIZE

    # Fold batch into the M dimension for all dense projections / FFN
    # (free reshape outside the kernel).
    x2 = x.reshape(B * T, C)

    # Pre-pack weights (free XLA ops outside the kernel):
    #   Wqkv = [Wq | Wk | Wv]  -> (C, 3C); matmul operands cast to bf16.
    wqkv = jnp.concatenate(
        [params["wq"], params["wk"], params["wv"]], axis=1).astype(jnp.bfloat16)
    wproj = params["wproj"].astype(jnp.bfloat16)
    w1 = params["w1"].astype(jnp.bfloat16)
    w2 = params["w2"].astype(jnp.bfloat16)

    kernel = functools.partial(block_kernel, batch=B, seq=T)

    # Single kernel invocation: no grid, every operand fully resident in VMEM
    # (weights ~30 KB bf16 + activations a few KB -- far under any VMEM limit).
    out = pl.pallas_call(
        kernel,
        out_shape=jax.ShapeDtypeStruct((B * T, C), x.dtype),
    )(x2,
      params["ln1_w"], params["ln1_b"],
      wqkv, wproj, params["bproj"],
      params["ln2_w"], params["ln2_b"],
      w1, params["b1"], w2, params["b2"])

    return out.reshape(B, T, C)


def init_params(key):
    C = N_EMBED
    ks = jax.random.split(key, 8)
    scale = 0.05
    return {
        "ln1_w": jnp.ones((1, C), jnp.float32),
        "ln1_b": jnp.zeros((1, C), jnp.float32),
        # Per-head q/k/v weights packed column-wise: columns [h*hs:(h+1)*hs]
        # belong to head h (equivalent to the per-head nn.Linear weights).
        "wq": scale * jax.random.normal(ks[0], (C, C), jnp.float32),
        "wk": scale * jax.random.normal(ks[1], (C, C), jnp.float32),
        "wv": scale * jax.random.normal(ks[2], (C, C), jnp.float32),
        "wproj": scale * jax.random.normal(ks[3], (C, C), jnp.float32),
        "bproj": scale * jax.random.normal(ks[4], (1, C), jnp.float32),
        "ln2_w": jnp.ones((1, C), jnp.float32),
        "ln2_b": jnp.zeros((1, C), jnp.float32),
        "w1": scale * jax.random.normal(ks[5], (C, 4 * C), jnp.float32),
        "b1": jnp.zeros((1, 4 * C), jnp.float32),
        "w2": scale * jax.random.normal(ks[6], (4 * C, C), jnp.float32),
        "b2": jnp.zeros((1, C), jnp.float32),
    }


def reference_forward(x, p):
    """Pure-JAX f32 reference mirroring the PyTorch Block (eval mode)."""
    def ln(v, w, b):
        mu = jnp.mean(v, -1, keepdims=True)
        var = jnp.mean((v - mu) ** 2, -1, keepdims=True)
        return (v - mu) / jnp.sqrt(var + LN_EPS) * w[0] + b[0]

    B, T, C = x.shape
    h = ln(x, p["ln1_w"], p["ln1_b"])
    q = h @ p["wq"]; k = h @ p["wk"]; v = h @ p["wv"]
    mask = jnp.tril(jnp.ones((T, T), bool))
    outs = []
    for hd in range(N_HEAD):
        lo, hi = hd * HEAD_SIZE, (hd + 1) * HEAD_SIZE
        s = jnp.einsum("btd,bsd->bts", q[..., lo:hi], k[..., lo:hi]) * C ** -0.5
        s = jnp.where(mask, s, -jnp.inf)
        w = jax.nn.softmax(s, axis=-1)
        outs.append(jnp.einsum("bts,bsd->btd", w, v[..., lo:hi]))
    sa = jnp.concatenate(outs, -1) @ p["wproj"] + p["bproj"][0]
    x1 = x + sa
    h2 = ln(x1, p["ln2_w"], p["ln2_b"])
    f = jnp.maximum(h2 @ p["w1"] + p["b1"][0], 0.0) @ p["w2"] + p["b2"][0]
    return x1 + f


if __name__ == "__main__":
    key = jax.random.PRNGKey(0)
    kx, kp = jax.random.split(key)
    B, T, C = 2, BLOCK_SIZE, N_EMBED          # (2, 8, 32)
    x = jax.random.normal(kx, (B, T, C), jnp.float32)
    params = init_params(kp)

    fwd = jax.jit(block_forward)
    out = jax.block_until_ready(fwd(x, params))

    ref = reference_forward(x, params)
    assert out.shape == (B, T, C)
    # Tolerance covers bf16 matmul operands (f32 accumulation) and the
    # approx reciprocal in the softmax normalization.
    err = float(jnp.max(jnp.abs(out - ref)))
    assert jnp.allclose(out, ref, atol=2e-2, rtol=2e-2), err
    print("KERNEL_OK")
</pallas_src>

<mosaic_0001>
module attributes {stable_mosaic.version = 11 : i64} {
  func.func @block_kernel(%arg0: memref<16x32xf32, #tpu.memory_space<vmem>>, %arg1: memref<1x32xf32, #tpu.memory_space<vmem>>, %arg2: memref<1x32xf32, #tpu.memory_space<vmem>>, %arg3: memref<32x96xbf16, #tpu.memory_space<vmem>>, %arg4: memref<32x32xbf16, #tpu.memory_space<vmem>>, %arg5: memref<1x32xf32, #tpu.memory_space<vmem>>, %arg6: memref<1x32xf32, #tpu.memory_space<vmem>>, %arg7: memref<1x32xf32, #tpu.memory_space<vmem>>, %arg8: memref<32x128xbf16, #tpu.memory_space<vmem>>, %arg9: memref<1x128xf32, #tpu.memory_space<vmem>>, %arg10: memref<128x32xbf16, #tpu.memory_space<vmem>>, %arg11: memref<1x32xf32, #tpu.memory_space<vmem>>, %arg12: memref<16x32xf32, #tpu.memory_space<vmem>>) attributes {dimension_semantics = [], scalar_prefetch = 0 : i64, scratch_operands = 0 : i64, tpu.core_type = #tpu.core_type<tc>} {
    %c0 = arith.constant 0 : index
    %c0_0 = arith.constant 0 : index
    %0 = vector.load %arg0[%c0, %c0_0] : memref<16x32xf32, #tpu.memory_space<vmem>>, vector<16x32xf32>
    %c0_1 = arith.constant 0 : index
    %c0_2 = arith.constant 0 : index
    %1 = vector.load %arg1[%c0_1, %c0_2] : memref<1x32xf32, #tpu.memory_space<vmem>>, vector<1x32xf32>
    %c0_3 = arith.constant 0 : index
    %c0_4 = arith.constant 0 : index
    %2 = vector.load %arg2[%c0_3, %c0_4] : memref<1x32xf32, #tpu.memory_space<vmem>>, vector<1x32xf32>
    %cst = arith.constant dense<0.000000e+00> : vector<16xf32>
    %3 = vector.multi_reduction <add>, %0, %cst [1] : vector<16x32xf32> to vector<16xf32>
    %4 = vector.shape_cast %3 : vector<16xf32> to vector<16x1xf32>
    %cst_5 = arith.constant 3.200000e+01 : f32
    %5 = vector.broadcast %cst_5 : f32 to vector<16x1xf32>
    %6 = arith.divf %4, %5 : vector<16x1xf32>
    %7 = vector.broadcast %6 : vector<16x1xf32> to vector<16x32xf32>
    %8 = arith.subf %0, %7 : vector<16x32xf32>
    %9 = vector.broadcast %6 : vector<16x1xf32> to vector<16x32xf32>
    %10 = arith.subf %0, %9 : vector<16x32xf32>
    %11 = arith.mulf %8, %10 : vector<16x32xf32>
    %cst_6 = arith.constant dense<0.000000e+00> : vector<16xf32>
    %12 = vector.multi_reduction <add>, %11, %cst_6 [1] : vector<16x32xf32> to vector<16xf32>
    %13 = vector.shape_cast %12 : vector<16xf32> to vector<16x1xf32>
    %cst_7 = arith.constant 3.200000e+01 : f32
    %14 = vector.broadcast %cst_7 : f32 to vector<16x1xf32>
    %15 = arith.divf %13, %14 : vector<16x1xf32>
    %16 = vector.broadcast %6 : vector<16x1xf32> to vector<16x32xf32>
    %17 = arith.subf %0, %16 : vector<16x32xf32>
    %cst_8 = arith.constant 9.99999974E-6 : f32
    %18 = vector.broadcast %cst_8 : f32 to vector<16x1xf32>
    %19 = arith.addf %15, %18 : vector<16x1xf32>
    %20 = math.rsqrt %19 : vector<16x1xf32>
    %21 = vector.broadcast %20 : vector<16x1xf32> to vector<16x32xf32>
    %22 = arith.mulf %17, %21 : vector<16x32xf32>
    %23 = vector.broadcast %1 : vector<1x32xf32> to vector<16x32xf32>
    %24 = arith.mulf %22, %23 : vector<16x32xf32>
    %25 = vector.broadcast %2 : vector<1x32xf32> to vector<16x32xf32>
    %26 = arith.addf %24, %25 : vector<16x32xf32>
    %27 = arith.truncf %26 : vector<16x32xf32> to vector<16x32xbf16>
    %c0_9 = arith.constant 0 : index
    %c0_10 = arith.constant 0 : index
    %28 = vector.load %arg3[%c0_9, %c0_10] : memref<32x96xbf16, #tpu.memory_space<vmem>>, vector<32x96xbf16>
    %cst_11 = arith.constant dense<0.000000e+00> : vector<16x96xf32>
    %29 = tpu.matmul %27, %28, %cst_11 {dimension_numbers = #tpu.dot_dimension_numbers<[1], [0], [0], [1], [0, 0, 1, 1], [], []>} : vector<16x32xbf16>, vector<32x96xbf16>, vector<16x96xf32> -> vector<16x96xf32>
    %30 = vector.extract_strided_slice %29 {offsets = [0, 0], sizes = [16, 32], strides = [1, 1]} : vector<16x96xf32> to vector<16x32xf32>
    %cst_12 = arith.constant 0.176776692 : f32
    %31 = vector.broadcast %cst_12 : f32 to vector<16x32xf32>
    %32 = arith.mulf %30, %31 : vector<16x32xf32>
    %33 = vector.extract_strided_slice %29 {offsets = [0, 32], sizes = [16, 32], strides = [1, 1]} : vector<16x96xf32> to vector<16x32xf32>
    %34 = vector.extract_strided_slice %29 {offsets = [0, 64], sizes = [16, 32], strides = [1, 1]} : vector<16x96xf32> to vector<16x32xf32>
    %35 = vector.extract_strided_slice %32 {offsets = [0, 0], sizes = [16, 8], strides = [1, 1]} : vector<16x32xf32> to vector<16x8xf32>
    %36 = vector.shape_cast %35 : vector<16x8xf32> to vector<2x8x8xf32>
    %37 = vector.extract_strided_slice %32 {offsets = [0, 8], sizes = [16, 8], strides = [1, 1]} : vector<16x32xf32> to vector<16x8xf32>
    %38 = vector.shape_cast %37 : vector<16x8xf32> to vector<2x8x8xf32>
    %39 = vector.extract_strided_slice %32 {offsets = [0, 16], sizes = [16, 8], strides = [1, 1]} : vector<16x32xf32> to vector<16x8xf32>
    %40 = vector.shape_cast %39 : vector<16x8xf32> to vector<2x8x8xf32>
    %41 = vector.extract_strided_slice %32 {offsets = [0, 24], sizes = [16, 8], strides = [1, 1]} : vector<16x32xf32> to vector<16x8xf32>
    %42 = vector.shape_cast %41 : vector<16x8xf32> to vector<2x8x8xf32>
    %43 = tpu.concatenate %36, %38, %40, %42 in 0 : vector<2x8x8xf32>, vector<2x8x8xf32>, vector<2x8x8xf32>, vector<2x8x8xf32> -> vector<8x8x8xf32>
    %44 = arith.truncf %43 : vector<8x8x8xf32> to vector<8x8x8xbf16>
    %45 = vector.extract_strided_slice %33 {offsets = [0, 0], sizes = [16, 8], strides = [1, 1]} : vector<16x32xf32> to vector<16x8xf32>
    %46 = vector.shape_cast %45 : vector<16x8xf32> to vector<2x8x8xf32>
    %47 = vector.extract_strided_slice %33 {offsets = [0, 8], sizes = [16, 8], strides = [1, 1]} : vector<16x32xf32> to vector<16x8xf32>
    %48 = vector.shape_cast %47 : vector<16x8xf32> to vector<2x8x8xf32>
    %49 = vector.extract_strided_slice %33 {offsets = [0, 16], sizes = [16, 8], strides = [1, 1]} : vector<16x32xf32> to vector<16x8xf32>
    %50 = vector.shape_cast %49 : vector<16x8xf32> to vector<2x8x8xf32>
    %51 = vector.extract_strided_slice %33 {offsets = [0, 24], sizes = [16, 8], strides = [1, 1]} : vector<16x32xf32> to vector<16x8xf32>
    %52 = vector.shape_cast %51 : vector<16x8xf32> to vector<2x8x8xf32>
    %53 = tpu.concatenate %46, %48, %50, %52 in 0 : vector<2x8x8xf32>, vector<2x8x8xf32>, vector<2x8x8xf32>, vector<2x8x8xf32> -> vector<8x8x8xf32>
    %54 = arith.truncf %53 : vector<8x8x8xf32> to vector<8x8x8xbf16>
    %55 = vector.extract_strided_slice %34 {offsets = [0, 0], sizes = [16, 8], strides = [1, 1]} : vector<16x32xf32> to vector<16x8xf32>
    %56 = vector.shape_cast %55 : vector<16x8xf32> to vector<2x8x8xf32>
    %57 = vector.extract_strided_slice %34 {offsets = [0, 8], sizes = [16, 8], strides = [1, 1]} : vector<16x32xf32> to vector<16x8xf32>
    %58 = vector.shape_cast %57 : vector<16x8xf32> to vector<2x8x8xf32>
    %59 = vector.extract_strided_slice %34 {offsets = [0, 16], sizes = [16, 8], strides = [1, 1]} : vector<16x32xf32> to vector<16x8xf32>
    %60 = vector.shape_cast %59 : vector<16x8xf32> to vector<2x8x8xf32>
    %61 = vector.extract_strided_slice %34 {offsets = [0, 24], sizes = [16, 8], strides = [1, 1]} : vector<16x32xf32> to vector<16x8xf32>
    %62 = vector.shape_cast %61 : vector<16x8xf32> to vector<2x8x8xf32>
    %63 = tpu.concatenate %56, %58, %60, %62 in 0 : vector<2x8x8xf32>, vector<2x8x8xf32>, vector<2x8x8xf32>, vector<2x8x8xf32> -> vector<8x8x8xf32>
    %64 = arith.truncf %63 : vector<8x8x8xf32> to vector<8x8x8xbf16>
    "tpu.trace_start"() <{level = 10 : i32, message = "bqd,bkd->bqk"}> : () -> ()
    %cst_13 = arith.constant dense<0.000000e+00> : vector<8x8x8xf32>
    %65 = tpu.matmul %44, %54, %cst_13 {dimension_numbers = #tpu.dot_dimension_numbers<[2], [2], [1], [1], [0, 0, 0, 1, 1, 1], [0], [0]>} : vector<8x8x8xbf16>, vector<8x8x8xbf16>, vector<8x8x8xf32> -> vector<8x8x8xf32>
    "tpu.trace_stop"() : () -> ()
    %66 = tpu.iota {dimensions = array<i32: 0>} : vector<8x8xi32>
    %67 = tpu.iota {dimensions = array<i32: 1>} : vector<8x8xi32>
    %68 = arith.cmpi sle, %67, %66 : vector<8x8xi32>
    %69 = vector.shape_cast %68 : vector<8x8xi1> to vector<1x8x8xi1>
    %cst_14 = arith.constant -1.000000e+30 : f32
    %70 = vector.shape_cast %69 : vector<1x8x8xi1> to vector<1x8x8xi1>
    %71 = vector.broadcast %70 : vector<1x8x8xi1> to vector<8x8x8xi1>
    %72 = vector.broadcast %cst_14 : f32 to vector<8x8x8xf32>
    %73 = arith.select %71, %65, %72 : vector<8x8x8xi1>, vector<8x8x8xf32>
    %cst_15 = arith.constant dense<0xFF800000> : vector<8x8xf32>
    %74 = vector.multi_reduction <maximumf>, %73, %cst_15 [2] : vector<8x8x8xf32> to vector<8x8xf32>
    %75 = vector.shape_cast %74 : vector<8x8xf32> to vector<8x8x1xf32>
    %76 = vector.broadcast %75 : vector<8x8x1xf32> to vector<8x8x8xf32>
    %77 = arith.subf %73, %76 : vector<8x8x8xf32>
    %78 = math.exp %77 : vector<8x8x8xf32>
    %cst_16 = arith.constant dense<0.000000e+00> : vector<8x8xf32>
    %79 = vector.multi_reduction <add>, %78, %cst_16 [2] : vector<8x8x8xf32> to vector<8x8xf32>
    %80 = vector.shape_cast %79 : vector<8x8xf32> to vector<8x8x1xf32>
    %81 = tpu.reciprocal %80 {approx = true} : vector<8x8x1xf32> -> vector<8x8x1xf32>
    %82 = vector.broadcast %81 : vector<8x8x1xf32> to vector<8x8x8xf32>
    %83 = arith.mulf %78, %82 : vector<8x8x8xf32>
    %84 = arith.truncf %83 : vector<8x8x8xf32> to vector<8x8x8xbf16>
    "tpu.trace_start"() <{level = 10 : i32, message = "bqk,bkd->bqd"}> : () -> ()
    %cst_17 = arith.constant dense<0.000000e+00> : vector<8x8x8xf32>
    %85 = tpu.matmul %84, %64, %cst_17 {dimension_numbers = #tpu.dot_dimension_numbers<[2], [1], [1], [2], [0, 0, 0, 1, 1, 2], [0], [0]>} : vector<8x8x8xbf16>, vector<8x8x8xbf16>, vector<8x8x8xf32> -> vector<8x8x8xf32>
    "tpu.trace_stop"() : () -> ()
    %86 = vector.extract_strided_slice %85 {offsets = [0, 0, 0], sizes = [2, 8, 8], strides = [1, 1, 1]} : vector<8x8x8xf32> to vector<2x8x8xf32>
    %87 = vector.shape_cast %86 : vector<2x8x8xf32> to vector<16x8xf32>
    %88 = vector.extract_strided_slice %85 {offsets = [2, 0, 0], sizes = [2, 8, 8], strides = [1, 1, 1]} : vector<8x8x8xf32> to vector<2x8x8xf32>
    %89 = vector.shape_cast %88 : vector<2x8x8xf32> to vector<16x8xf32>
    %90 = vector.extract_strided_slice %85 {offsets = [4, 0, 0], sizes = [2, 8, 8], strides = [1, 1, 1]} : vector<8x8x8xf32> to vector<2x8x8xf32>
    %91 = vector.shape_cast %90 : vector<2x8x8xf32> to vector<16x8xf32>
    %92 = vector.extract_strided_slice %85 {offsets = [6, 0, 0], sizes = [2, 8, 8], strides = [1, 1, 1]} : vector<8x8x8xf32> to vector<2x8x8xf32>
    %93 = vector.shape_cast %92 : vector<2x8x8xf32> to vector<16x8xf32>
    %94 = tpu.concatenate %87, %89, %91, %93 in 1 : vector<16x8xf32>, vector<16x8xf32>, vector<16x8xf32>, vector<16x8xf32> -> vector<16x32xf32>
    %95 = arith.truncf %94 : vector<16x32xf32> to vector<16x32xbf16>
    %c0_18 = arith.constant 0 : index
    %c0_19 = arith.constant 0 : index
    %96 = vector.load %arg4[%c0_18, %c0_19] : memref<32x32xbf16, #tpu.memory_space<vmem>>, vector<32x32xbf16>
    %cst_20 = arith.constant dense<0.000000e+00> : vector<16x32xf32>
    %97 = tpu.matmul %95, %96, %cst_20 {dimension_numbers = #tpu.dot_dimension_numbers<[1], [0], [0], [1], [0, 0, 1, 1], [], []>} : vector<16x32xbf16>, vector<32x32xbf16>, vector<16x32xf32> -> vector<16x32xf32>
    %c0_21 = arith.constant 0 : index
    %c0_22 = arith.constant 0 : index
    %98 = vector.load %arg5[%c0_21, %c0_22] : memref<1x32xf32, #tpu.memory_space<vmem>>, vector<1x32xf32>
    %99 = vector.broadcast %98 : vector<1x32xf32> to vector<16x32xf32>
    %100 = arith.addf %97, %99 : vector<16x32xf32>
    %101 = arith.addf %0, %100 : vector<16x32xf32>
    %c0_23 = arith.constant 0 : index
    %c0_24 = arith.constant 0 : index
    %102 = vector.load %arg6[%c0_23, %c0_24] : memref<1x32xf32, #tpu.memory_space<vmem>>, vector<1x32xf32>
    %c0_25 = arith.constant 0 : index
    %c0_26 = arith.constant 0 : index
    %103 = vector.load %arg7[%c0_25, %c0_26] : memref<1x32xf32, #tpu.memory_space<vmem>>, vector<1x32xf32>
    %cst_27 = arith.constant dense<0.000000e+00> : vector<16xf32>
    %104 = vector.multi_reduction <add>, %101, %cst_27 [1] : vector<16x32xf32> to vector<16xf32>
    %105 = vector.shape_cast %104 : vector<16xf32> to vector<16x1xf32>
    %cst_28 = arith.constant 3.200000e+01 : f32
    %106 = vector.broadcast %cst_28 : f32 to vector<16x1xf32>
    %107 = arith.divf %105, %106 : vector<16x1xf32>
    %108 = vector.broadcast %107 : vector<16x1xf32> to vector<16x32xf32>
    %109 = arith.subf %101, %108 : vector<16x32xf32>
    %110 = vector.broadcast %107 : vector<16x1xf32> to vector<16x32xf32>
    %111 = arith.subf %101, %110 : vector<16x32xf32>
    %112 = arith.mulf %109, %111 : vector<16x32xf32>
    %cst_29 = arith.constant dense<0.000000e+00> : vector<16xf32>
    %113 = vector.multi_reduction <add>, %112, %cst_29 [1] : vector<16x32xf32> to vector<16xf32>
    %114 = vector.shape_cast %113 : vector<16xf32> to vector<16x1xf32>
    %cst_30 = arith.constant 3.200000e+01 : f32
    %115 = vector.broadcast %cst_30 : f32 to vector<16x1xf32>
    %116 = arith.divf %114, %115 : vector<16x1xf32>
    %117 = vector.broadcast %107 : vector<16x1xf32> to vector<16x32xf32>
    %118 = arith.subf %101, %117 : vector<16x32xf32>
    %cst_31 = arith.constant 9.99999974E-6 : f32
    %119 = vector.broadcast %cst_31 : f32 to vector<16x1xf32>
    %120 = arith.addf %116, %119 : vector<16x1xf32>
    %121 = math.rsqrt %120 : vector<16x1xf32>
    %122 = vector.broadcast %121 : vector<16x1xf32> to vector<16x32xf32>
    %123 = arith.mulf %118, %122 : vector<16x32xf32>
    %124 = vector.broadcast %102 : vector<1x32xf32> to vector<16x32xf32>
    %125 = arith.mulf %123, %124 : vector<16x32xf32>
    %126 = vector.broadcast %103 : vector<1x32xf32> to vector<16x32xf32>
    %127 = arith.addf %125, %126 : vector<16x32xf32>
    %128 = arith.truncf %127 : vector<16x32xf32> to vector<16x32xbf16>
    %c0_32 = arith.constant 0 : index
    %c0_33 = arith.constant 0 : index
    %129 = vector.load %arg8[%c0_32, %c0_33] : memref<32x128xbf16, #tpu.memory_space<vmem>>, vector<32x128xbf16>
    %cst_34 = arith.constant dense<0.000000e+00> : vector<16x128xf32>
    %130 = tpu.matmul %128, %129, %cst_34 {dimension_numbers = #tpu.dot_dimension_numbers<[1], [0], [0], [1], [0, 0, 1, 1], [], []>} : vector<16x32xbf16>, vector<32x128xbf16>, vector<16x128xf32> -> vector<16x128xf32>
    %c0_35 = arith.constant 0 : index
    %c0_36 = arith.constant 0 : index
    %131 = vector.load %arg9[%c0_35, %c0_36] : memref<1x128xf32, #tpu.memory_space<vmem>>, vector<1x128xf32>
    %132 = vector.broadcast %131 : vector<1x128xf32> to vector<16x128xf32>
    %133 = arith.addf %130, %132 : vector<16x128xf32>
    %cst_37 = arith.constant 0.000000e+00 : f32
    %134 = vector.broadcast %cst_37 : f32 to vector<16x128xf32>
    %135 = arith.maximumf %133, %134 : vector<16x128xf32>
    %136 = arith.truncf %135 : vector<16x128xf32> to vector<16x128xbf16>
    %c0_38 = arith.constant 0 : index
    %c0_39 = arith.constant 0 : index
    %137 = vector.load %arg10[%c0_38, %c0_39] : memref<128x32xbf16, #tpu.memory_space<vmem>>, vector<128x32xbf16>
    %cst_40 = arith.constant dense<0.000000e+00> : vector<16x32xf32>
    %138 = tpu.matmul %136, %137, %cst_40 {dimension_numbers = #tpu.dot_dimension_numbers<[1], [0], [0], [1], [0, 0, 1, 1], [], []>} : vector<16x128xbf16>, vector<128x32xbf16>, vector<16x32xf32> -> vector<16x32xf32>
    %c0_41 = arith.constant 0 : index
    %c0_42 = arith.constant 0 : index
    %139 = vector.load %arg11[%c0_41, %c0_42] : memref<1x32xf32, #tpu.memory_space<vmem>>, vector<1x32xf32>
    %140 = vector.broadcast %139 : vector<1x32xf32> to vector<16x32xf32>
    %141 = arith.addf %138, %140 : vector<16x32xf32>
    %142 = arith.addf %101, %141 : vector<16x32xf32>
    %c0_43 = arith.constant 0 : index
    %c0_44 = arith.constant 0 : index
    %143 = vector.load %arg12[%c0_43, %c0_44] : memref<16x32xf32, #tpu.memory_space<vmem>>, vector<16x32xf32>
    tpu.vector_store %arg12[%c0_43, %c0_44], %142 {strides = array<i32>} : memref<16x32xf32, #tpu.memory_space<vmem>>, vector<16x32xf32>,
    return
  }
}

</mosaic_0001>

<bundles_post_ra>
// kernel: block_forward.1
= control target key start
LH: loop header
LB: loop body
LE: loop exit
PB: predicated region body
PF: predicated region fallthrough
CT: control target
= control target key end

     0   :  { %vm47_vm0 = vcmask 261120   ;;  %s1459_s0 = inlined_call_operand.vmem [shape: f32[16,32], index: 0, kind: input, shape index: {}]   ;;  %s1460_s1 = inlined_call_operand.vmem [shape: f32[1,32], index: 1, kind: input, shape index: {}]   ;;  %s1461_s2 = inlined_call_operand.vmem [shape: f32[1,32], index: 2, kind: input, shape index: {}]   ;;  %s1462_s3 = inlined_call_operand.vmem [shape: bf16[32,96], index: 3, kind: input, shape index: {}]   ;;  %s1463_s4 = inlined_call_operand.vmem [shape: bf16[32,32], index: 4, kind: input, shape index: {}]   ;;  %s1464_s5 = inlined_call_operand.vmem [shape: f32[1,32], index: 5, kind: input, shape index: {}]   ;;  %s1465_s6 = inlined_call_operand.vmem [shape: f32[1,32], index: 6, kind: input, shape index: {}]   ;;  %s1466_s7 = inlined_call_operand.vmem [shape: f32[1,32], index: 7, kind: input, shape index: {}]   ;;  %s1467_s8 = inlined_call_operand.vmem [shape: bf16[32,128], index: 8, kind: input, shape index: {}]   ;;  %s1468_s9 = inlined_call_operand.vmem [shape: f32[1,128], index: 9, kind: input, shape index: {}]   ;;  %s1469_s10 = inlined_call_operand.vmem [shape: bf16[128,32], index: 10, kind: input, shape index: {}]   ;;  %s1470_s11 = inlined_call_operand.vmem [shape: f32[1,32], index: 11, kind: input, shape index: {}]   ;;  %s1471_s12 = inlined_call_operand.hbm [shape: f32[16,32], index: 12, kind: output, shape index: {}]  }
   0x1   :  { %v1216_v0 = vld [vmem:[%s1459_s0] sm:$0xff] }
   0x2   :  { %v48_v1 = vsel %vm47_vm0, %v1216_v0, 0.0 }
   0x3   :  { %49 = vadd.xlane.f32.xlu0 %v48_v1 }
   0x4   :  { %17 = vsyncpa [#allocation3], 0  ;;  %v1223_v2 = vld [vmem:[%s1459_s0 + $0x8] sm:$0xff]  ;;  %v1137_v4 = vmov 32.0   ;;  %v1022_v23 = vld [vmem:[%s1462_s3] sm:$0xff]  ;;  %s1138_s13 = smov 104  }
   0x5   :  { %v51_v3 = vsel %vm47_vm0, %v1223_v2, 0.0  ;;  %1069 = vrcp.f32 %v1137_v4  ;;  %v1023_v21 = vld [vmem:[%s1462_s3 + $0x8] sm:$0xff]  ;;  %v1062_v42 = vld [vmem:[%s1460_s1] ss:$0 sm:$0xff]  ;;  %s1139_s1 = smov 120   ;;  %s1140_s14 = smov 96  }
   0x6   :  { %135 = vmatpush.bf16.msra.mxu0 %v1023_v21  ;;  %v1063_v47 = vld [vmem:[%s1461_s2] ss:$0 sm:$0xff]  ;;  %s1141_s2 = smov 112   ;;  %vm206_vm8 = vcmask 64512   ;;  %s1142_s15 = smov 64   ;;  %vm510_vm9 = vcmask 1043456  }
   0x7   :  { %s1143_s16 = smov 8   ;;  %s1144_s17 = smov 24   ;;  %vm700_vm11 = vcmask 130048   ;;  %vm703_vm12 = vcmask 195584  }
   0x8   :  { %s1145_s18 = smov 16   ;;  %s935_s26 = sshll.u32 %s1471_s12, 4  ;;  %s936_s26 = int_to_ptr.hbm [resolvable:$true] %s935_s26 }
   0xa   :  { %136 = vmatpush.bf16.msra.mxu0 %v1022_v23 }
   0xb   :  { %52 = vadd.xlane.f32.xlu0 %v51_v3  ;;  %v1070_v5 = vpop.eup %1069 }
   0xc   :  { %v55_v6 = vmul.f32 32.0, %v1070_v5  ;;  %vm59_vm1 = vweird.f32 %v1070_v5 }
   0xe   :  { %v56_v7 = vsub.f32 1.0, %v55_v6 }
  0x10   :  { %v57_v8 = vmul.f32 %v1070_v5, %v56_v7 }
  0x12   :  { %v58_v9 = vadd.f32 %v1070_v5, %v57_v8 }
  0x14   :  { %v1227_v10 = vsel %vm59_vm1, %v1070_v5, %v58_v9 }
  0x76   :  { %v50_v11 = vpop.xlane.xlu0 %49 }
  0x77   :  { %v61_v12 = vmul.f32 %v1227_v10, %v50_v11 }
  0x79   :  { %v63_v13 = vsub.f32 %v1216_v0, %v61_v12 }
  0x7b   :  { %v65_v14 = vmul.f32 %v63_v13, %v63_v13 }
  0x7d   :  { %v67_v15 = vsel %vm47_vm0, %v65_v14, 0.0 }
  0x7e   :  { %68 = vadd.xlane.f32.xlu1 %v67_v15  ;;  %v53_v16 = vpop.xlane.xlu0 %52 }
  0x7f   :  { %v62_v17 = vmul.f32 %v1227_v10, %v53_v16 }
  0x81   :  { %v64_v18 = vsub.f32 %v1223_v2, %v62_v17 }
  0x83   :  { %v66_v19 = vmul.f32 %v64_v18, %v64_v18 }
  0x85   :  { %v70_v20 = vsel %vm47_vm0, %v66_v19, 0.0 }
  0x86   :  { %71 = vadd.xlane.f32.xlu1 %v70_v20 }
  0xf1   :  { %v69_v22 = vpop.xlane.xlu1 %68 }
  0xf2   :  { %v73_v24 = vmul.f32 %v69_v22, %v1227_v10 }
  0xf4   :  { %v75_v25 = vadd.f32 1e-05, %v73_v24 }
  0xf6   :  { %1071 = vrsqrt.f32 %v75_v25  ;;  %vm83_vm3 = vweird.f32 %v75_v25 }
  0xf9   :  { %v72_v26 = vpop.xlane.xlu1 %71 }
  0xfa   :  { %v74_v27 = vmul.f32 %v72_v26, %v1227_v10 }
  0xfc   :  { %v1072_v28 = vpop.eup %1071  ;;  %v76_v29 = vadd.f32 1e-05, %v74_v27 }
  0xfd   :  { %v78_v30 = vmul.f32 %v1072_v28, %v75_v25  ;;  %vm84_vm2 = vweird.f32 %v1072_v28 }
  0xfe   :  { %1073 = vrsqrt.f32 %v76_v29  ;;  %vm85_vm4 = vmor %vm83_vm3, %vm84_vm2  ;;  %vm93_vm6 = vweird.f32 %v76_v29 }
  0xff   :  { %v79_v31 = vmul.f32 %v1072_v28, %v78_v30 }
 0x101   :  { %v80_v32 = vmul.f32 0.5, %v79_v31 }
 0x103   :  { %v81_v33 = vsub.f32 1.5, %v80_v32 }
 0x104   :  { %v1074_v34 = vpop.eup %1073 }
 0x105   :  { %v82_v35 = vmul.f32 %v1072_v28, %v81_v33  ;;  %v88_v36 = vmul.f32 %v1074_v34, %v76_v29  ;;  %vm94_vm5 = vweird.f32 %v1074_v34 }
 0x106   :  { %vm95_vm7 = vmor %vm93_vm6, %vm94_vm5 }
 0x107   :  { %v89_v37 = vmul.f32 %v1074_v34, %v88_v36  ;;  %v86_v38 = vsel %vm85_vm4, %v1072_v28, %v82_v35 }
 0x108   :  { %v97_v41 = vmul.f32 %v86_v38, %v63_v13 }
 0x109   :  { %v90_v39 = vmul.f32 0.5, %v89_v37 }
 0x10a   :  { %v102_v46 = vmul.f32 %v1062_v42, %v97_v41 }
 0x10b   :  { %v91_v40 = vsub.f32 1.5, %v90_v39 }
 0x10c   :  { %v107_v49 = vadd.f32 %v1063_v47, %v102_v46 }
 0x10d   :  { %v92_v43 = vmul.f32 %v1074_v34, %v91_v40 }
 0x10f   :  { %v96_v44 = vsel %vm95_vm7, %v1074_v34, %v92_v43 }
 0x110   :  { %v98_v45 = vmul.f32 %v96_v44, %v64_v18 }
 0x112   :  { %v103_v48 = vmul.f32 %v1062_v42, %v98_v45 }
 0x114   :  { %v108_v50 = vadd.f32 %v1063_v47, %v103_v48 }
 0x116   :  { %v109_v51 = vpack.c.bf16 %v108_v50, %v107_v49 }
 0x118   :  { %955 = vmatmul.msk.bf16.vlgmr.msra.gmra.mxu0 %vm47_vm0, %v109_v51 }
 0x195   :  { %v138_v52 = vpop.f32.mrf.mxu0 }
 0x196   :  { %187 = vrot.lane.b32.xlu1 %v138_v52, %s1138_s13  ;;  %175 = vrot.lane.b32.xlu2 %v138_v52, %s1139_s1  ;;  %v193_v53 = vpack.c.bf16 %v138_v52, %v138_v52  ;;  %v143_v60 = vmul.f32 0.17677669, %v138_v52 }
 0x198   :  { %v202_v54 = vunpack.c.l.b16 %v193_v53  ;;  %v165_v26 = vpack.c.bf16 %v143_v60, %v143_v60 }
 0x19a   :  { %v203_v55 = vpack.c.b16 %v202_v54, %v202_v54 }
 0x19d   :  { %v140_v56 = vpop.f32.mrf.mxu0 }
 0x19e   :  { %204 = vrot.lane.b32.xlu1 %v203_v55, %s1140_s14  ;;  %183 = vrot.lane.b32.xlu0 %v140_v56, %s1141_s2  ;;  %v194_v57 = vpack.c.bf16 %v140_v56, %v140_v56  ;;  %v144_v9 = vmul.f32 0.17677669, %v140_v56 }
 0x19f   :  { %177 = vrot.lane.b32.xlu2 %v140_v56, %s1139_s1 }
 0x1a0   :  { %v227_v58 = vunpack.c.l.b16 %v194_v57  ;;  %v166_v27 = vpack.c.bf16 %v144_v9, %v144_v9 }
 0x1a2   :  { %v228_v59 = vpack.c.b16 %v227_v58, %v227_v58 }
 0x1a7   :  { %181 = vrot.lane.b32.xlu2 %v138_v52, %s1141_s2 }
 0x1af   :  { %189 = vrot.lane.b32.xlu2 %v140_v56, %s1138_s13 }
 0x1b7   :  { %229 = vrot.lane.b32.xlu2 %v228_v59, %s1140_s14 }
 0x1bf   :  { %147 = vrot.lane.b32.xlu2 %v143_v60, %s1139_s1 }
 0x1f0   :  { %v176_v61 = vpop.permute.xlu2 %175 }
 0x1f1   :  { %v195_v62 = vpack.c.bf16 %v176_v61, %v176_v61 }
 0x1f3   :  { %v251_v63 = vunpack.c.l.b16 %v195_v62 }
 0x1f5   :  { %v252_v1 = vpack.c.b16 %v251_v63, %v251_v63 }
 0x1f7   :  { %253 = vrot.lane.b32.xlu0 %v252_v1, %s1140_s14 }
 0x1f9   :  { %v178_v3 = vpop.permute.xlu2 %177 }
 0x1fa   :  { %v196_v4 = vpack.c.bf16 %v178_v3, %v178_v3 }
 0x1fc   :  { %v275_v5 = vunpack.c.l.b16 %v196_v4 }
 0x1fe   :  { %v1260_v6 = vpack.c.b16 %v275_v5, %v275_v5 }
 0x200   :  { %277 = vrot.lane.b32.xlu0 %v1260_v6, %s1140_s14 }
 0x201   :  { %v182_v7 = vpop.permute.xlu2 %181 }
 0x202   :  { %v197_v8 = vpack.c.bf16 %v182_v7, %v182_v7 }
 0x204   :  { %v299_v14 = vunpack.c.l.b16 %v197_v8 }
 0x206   :  { %v1267_v17 = vpack.c.b16 %v299_v14, %v299_v14 }
 0x208   :  { %149 = vrot.lane.b32.xlu0 %v144_v9, %s1139_s1  ;;  %v188_v11 = vpop.permute.xlu1 %187 }
 0x209   :  { %v199_v12 = vpack.c.bf16 %v188_v11, %v188_v11  ;;  %v190_v13 = vpop.permute.xlu2 %189 }
 0x20a   :  { %v200_v28 = vpack.c.bf16 %v190_v13, %v190_v13 }
 0x20b   :  { %v347_v15 = vunpack.c.l.b16 %v199_v12 }
 0x20c   :  { %v371_v29 = vunpack.c.l.b16 %v200_v28 }
 0x20d   :  { %v1265_v16 = vpack.c.b16 %v347_v15, %v347_v15 }
 0x20e   :  { %v1286_v30 = vpack.c.b16 %v371_v29, %v371_v29 }
 0x20f   :  { %349 = vrot.lane.b32.xlu1 %v1265_v16, %s1140_s14 }
 0x210   :  { %301 = vrot.lane.b32.xlu0 %v1267_v17, %s1140_s14  ;;  %v205_v18 = vpop.permute.xlu1 %204  ;;  %v184_v19 = vpop.permute.xlu0 %183 }
 0x211   :  { %v198_v20 = vpack.c.bf16 %v184_v19, %v184_v19  ;;  %v230_v21 = vpop.permute.xlu2 %229  ;;  %v211_v22 = vsel %vm206_vm8, %v205_v18, 0 }
 0x212   :  { %220 = vmatpush.bf16.xpose.msra.mxu1 %v211_v22  ;;  %v235_v23 = vsel %vm206_vm8, %v230_v21, 0 }
 0x213   :  { %v323_v24 = vunpack.c.l.b16 %v198_v20  ;;  %244 = vmatpush.bf16.xpose.msra.mxu2 %v235_v23 }
 0x215   :  { %v1275_v25 = vpack.c.b16 %v323_v24, %v323_v24 }
 0x217   :  { %159 = vrot.lane.b32.xlu1 %v143_v60, %s1138_s13  ;;  %325 = vrot.lane.b32.xlu2 %v1275_v25, %s1140_s14 }
 0x218   :  { %161 = vrot.lane.b32.xlu0 %v144_v9, %s1138_s13 }
 0x219   :  { %956 = vmatmul.msk.bf16.vlgmr.msra.gmra.mxu1 %vm206_vm8, %v165_v26  ;;  %v148_v31 = vpop.permute.xlu2 %147 }
 0x21a   :  { %957 = vmatmul.msk.bf16.vlgmr.msra.gmra.mxu2 %vm206_vm8, %v166_v27  ;;  %v167_v34 = vpack.c.bf16 %v148_v31, %v148_v31 }
 0x21f   :  { %153 = vrot.lane.b32.xlu1 %v143_v60, %s1141_s2  ;;  %155 = vrot.lane.b32.xlu2 %v144_v9, %s1141_s2 }
 0x220   :  { %505 = vrot.lane.b32.xlu0 %v203_v55, %s1142_s15  ;;  %v394_v55 = vlaneseq }
 0x222   :  { %v395_v56 = vshrl.u32 %v394_v55, 7  ;;  %v397_v57 = vand.u32 127, %v394_v55 }
 0x224   :  { %vm1305_vm10 = vcmp.le.s32.totalorder %v397_v57, %v395_v56 }
 0x227   :  { %548 = vrot.lane.b32.xlu1 %v252_v1, %s1142_s15  ;;  %373 = vrot.lane.b32.xlu2 %v1286_v30, %s1140_s14 }
 0x22f   :  { %527 = vrot.lane.b32.xlu2 %v228_v59, %s1142_s15 }
 0x269   :  { %v254_v32 = vpop.permute.xlu0 %253 }
 0x26a   :  { %v259_v33 = vsel %vm206_vm8, %v254_v32, 0 }
 0x26b   :  { %268 = vmatpush.bf16.xpose.msra.mxu3 %v259_v33 }
 0x271   :  { %v326_v35 = vpop.permute.xlu2 %325 }
 0x272   :  { %v278_v36 = vpop.permute.xlu0 %277  ;;  %958 = vmatmul.msk.bf16.vlgmr.msra.gmra.mxu3 %vm206_vm8, %v167_v34  ;;  %v331_v37 = vsel %vm206_vm8, %v326_v35, 0 }
 0x273   :  { %v283_v38 = vsel %vm206_vm8, %v278_v36, 0  ;;  %340 = vmatpush.bf16.xpose.msrb.mxu2 %v331_v37 }
 0x274   :  { %292 = vmatpush.bf16.xpose.msrb.mxu0 %v283_v38 }
 0x279   :  { %v156_v39 = vpop.permute.xlu2 %155 }
 0x27a   :  { %v170_v40 = vpack.c.bf16 %v156_v39, %v156_v39  ;;  %v150_v41 = vpop.permute.xlu0 %149 }
 0x27b   :  { %v168_v42 = vpack.c.bf16 %v150_v41, %v150_v41 }
 0x27c   :  { %961 = vmatmul.msk.bf16.vlgmr.msrb.gmra.mxu2 %vm206_vm8, %v170_v40 }
 0x27d   :  { %959 = vmatmul.msk.bf16.vlgmr.msrb.gmra.mxu0 %vm206_vm8, %v168_v42 }
 0x281   :  { %v350_v43 = vpop.permute.xlu1 %349  ;;  %v374_v44 = vpop.permute.xlu2 %373 }
 0x282   :  { %v379_v45 = vsel %vm206_vm8, %v374_v44, 0  ;;  %v302_v46 = vpop.permute.xlu0 %301  ;;  %v355_v47 = vsel %vm206_vm8, %v350_v43, 0 }
 0x283   :  { %v307_v48 = vsel %vm206_vm8, %v302_v46, 0  ;;  %364 = vmatpush.bf16.xpose.msrb.mxu3 %v355_v47  ;;  %388 = vmatpush.bf16.xpose.msra.mxu0 %v379_v45 }
 0x284   :  { %316 = vmatpush.bf16.xpose.msrb.mxu1 %v307_v48 }
 0x289   :  { %v160_v49 = vpop.permute.xlu1 %159  ;;  %v528_v50 = vpop.permute.xlu2 %527 }
 0x28a   :  { %v171_v51 = vpack.c.bf16 %v160_v49, %v160_v49  ;;  %v533_v52 = vsel %vm510_vm9, %v528_v50, 0  ;;  %v162_v53 = vpop.permute.xlu0 %161 }
 0x28b   :  { %v172_v54 = vpack.c.bf16 %v162_v53, %v162_v53  ;;  %542 = vmatpush.bf16.msra.mxu2 %v533_v52 }
 0x28c   :  { %962 = vmatmul.msk.bf16.vlgmr.msrb.gmra.mxu3 %vm206_vm8, %v171_v51 }
 0x28d   :  { %963 = vmatmul.msk.bf16.vlgmr.msra.gmra.mxu0 %vm206_vm8, %v172_v54 }
 0x291   :  { %v154_v58 = vpop.permute.xlu1 %153 }
 0x292   :  { %v169_v59 = vpack.c.bf16 %v154_v58, %v154_v58  ;;  %v506_v60 = vpop.permute.xlu0 %505 }
 0x293   :  { %v512_v61 = vsel %vm510_vm9, %v506_v60, 0 }
 0x294   :  { %521 = vmatpush.bf16.msra.mxu1 %v512_v61 }
 0x295   :  { %960 = vmatmul.msk.bf16.vlgmr.msrb.gmra.mxu1 %vm206_vm8, %v169_v59 }
 0x296   :  { %v222_v63 = vpop.f32.mrf.mxu1 }
 0x297   :  { %v401_v1 = vsel %vm1305_vm10, %v222_v63, -1e+30 }
 0x298   :  { %v409_v3 = vsel %vm206_vm8, %v401_v1, -inf }
 0x299   :  { %v549_v4 = vpop.permute.xlu1 %548  ;;  %410 = vmax.xlane.f32.xlu0 %v409_v3 }
 0x29a   :  { %v554_v5 = vsel %vm510_vm9, %v549_v4, 0 }
 0x29b   :  { %563 = vmatpush.bf16.msra.mxu3 %v554_v5 }
 0x29d   :  { %v246_v7 = vpop.f32.mrf.mxu2 }
 0x29e   :  { %v402_v8 = vsel %vm1305_vm10, %v246_v7, -1e+30  ;;  %v224_v9 = vpop.f32.mrf.mxu1 }
 0x29f   :  { %v412_v11 = vsel %vm206_vm8, %v402_v8, -inf }
 0x2a0   :  { %413 = vmax.xlane.f32.xlu2 %v412_v11 }
 0x2a5   :  { %v248_v12 = vpop.f32.mrf.mxu2 }
 0x2f5   :  { %v270_v13 = vpop.f32.mrf.mxu3 }
 0x2f6   :  { %v403_v14 = vsel %vm1305_vm10, %v270_v13, -1e+30 }
 0x2f7   :  { %v415_v15 = vsel %vm206_vm8, %v403_v14, -inf }
 0x2f8   :  { %416 = vmax.xlane.f32.xlu1 %v415_v15 }
 0x2fa   :  { %v294_v18 = vpop.f32.mrf.mxu0 }
 0x2fb   :  { %v404_v42 = vsel %vm1305_vm10, %v294_v18, -1e+30 }
 0x2fc   :  { %v418_v44 = vsel %vm206_vm8, %v404_v42, -inf }
 0x2fd   :  { %v272_v19 = vpop.f32.mrf.mxu3 }
 0x2ff   :  { %v342_v20 = vpop.f32.mrf.mxu2 }
 0x300   :  { %v406_v45 = vsel %vm1305_vm10, %v342_v20, -1e+30 }
 0x301   :  { %v424_v48 = vsel %vm206_vm8, %v406_v45, -inf }
 0x302   :  { %v296_v21 = vpop.f32.mrf.mxu0 }
 0x307   :  { %v344_v22 = vpop.f32.mrf.mxu2 }
 0x30a   :  { %v390_v23 = vpop.f32.mrf.mxu0 }
 0x30b   :  { %v408_v49 = vsel %vm1305_vm10, %v390_v23, -1e+30 }
 0x30c   :  { %v411_v24 = vpop.xlane.xlu0 %410  ;;  %v430_v50 = vsel %vm206_vm8, %v408_v49, -inf }
 0x30d   :  { %v433_v26 = vsub.f32 %v401_v1, %v411_v24 }
 0x30f   :  { %v441_v27 = vmul.f32 1.442695, %v433_v26  ;;  %v366_v28 = vpop.f32.mrf.mxu3 }
 0x310   :  { %v407_v29 = vsel %vm1305_vm10, %v366_v28, -1e+30 }
 0x311   :  { %1075 = vpow2.f32 %v441_v27  ;;  %v427_v31 = vsel %vm206_vm8, %v407_v29, -inf }
 0x312   :  { %v318_v32 = vpop.f32.mrf.mxu1  ;;  %v392_v33 = vpop.f32.mrf.mxu0  ;;  %428 = vmax.xlane.f32.xlu0 %v427_v31 }
 0x313   :  { %v405_v34 = vsel %vm1305_vm10, %v318_v32, -1e+30  ;;  %v414_v35 = vpop.xlane.xlu2 %413 }
 0x314   :  { %v434_v36 = vsub.f32 %v402_v8, %v414_v35  ;;  %v421_v37 = vsel %vm206_vm8, %v405_v34, -inf }
 0x315   :  { %422 = vmax.xlane.f32.xlu2 %v421_v37 }
 0x316   :  { %v443_v38 = vmul.f32 1.442695, %v434_v36 }
 0x317   :  { %v1076_v39 = vpop.eup %1075  ;;  %v368_v40 = vpop.f32.mrf.mxu3 }
 0x318   :  { %1077 = vpow2.f32 %v443_v38  ;;  %v457_v41 = vsel %vm206_vm8, %v1076_v39, 0.0 }
 0x319   :  { %458 = vadd.xlane.f32.xlu1 %v457_v41 }
 0x31a   :  { %v320_v43 = vpop.f32.mrf.mxu1 }
 0x31d   :  { %419 = vmax.xlane.f32.xlu2 %v418_v44 }
 0x31e   :  { %v1078_v46 = vpop.eup %1077 }
 0x31f   :  { %v460_v47 = vsel %vm206_vm8, %v1078_v46, 0.0 }
 0x320   :  { %461 = vadd.xlane.f32.xlu0 %v460_v47 }
 0x321   :  { %425 = vmax.xlane.f32.xlu1 %v424_v48 }
 0x329   :  { %431 = vmax.xlane.f32.xlu1 %v430_v50 }
 0x335   :  { %569 = vrot.lane.b32.xlu2 %v1260_v6, %s1142_s15 }
 0x342   :  { %611 = vrot.lane.b32.xlu1 %v1275_v25, %s1142_s15 }
 0x36b   :  { %v417_v51 = vpop.xlane.xlu1 %416 }
 0x36c   :  { %v435_v57 = vsub.f32 %v403_v14, %v417_v51 }
 0x36e   :  { %v445_v60 = vmul.f32 1.442695, %v435_v57 }
 0x385   :  { %v429_v52 = vpop.xlane.xlu0 %428 }
 0x386   :  { %v439_v53 = vsub.f32 %v407_v29, %v429_v52 }
 0x388   :  { %v453_v54 = vmul.f32 1.442695, %v439_v53  ;;  %v423_v55 = vpop.xlane.xlu2 %422 }
 0x389   :  { %v437_v56 = vsub.f32 %v405_v34, %v423_v55 }
 0x38a   :  { %1079 = vpow2.f32 %v453_v54 }
 0x38b   :  { %v449_v58 = vmul.f32 1.442695, %v437_v56 }
 0x38c   :  { %v459_v59 = vpop.xlane.xlu1 %458 }
 0x38d   :  { %1081 = vpow2.f32 %v449_v58 }
 0x38e   :  { %1083 = vrcp.f32 %v459_v59 }
 0x38f   :  { %1085 = vpow2.f32 %v445_v60 }
 0x390   :  { %v1341_v61 = vpop.eup %1079  ;;  %v420_v62 = vpop.xlane.xlu2 %419 }
 0x391   :  { %v436_v6 = vsub.f32 %v404_v42, %v420_v62  ;;  %v475_v25 = vsel %vm206_vm8, %v1341_v61, 0.0 }
 0x392   :  { %476 = vadd.xlane.f32.xlu1 %v475_v25 }
 0x393   :  { %v1345_v63 = vpop.eup %1081  ;;  %v447_v1 = vmul.f32 1.442695, %v436_v6  ;;  %v462_v3 = vpop.xlane.xlu0 %461 }
 0x394   :  { %v1084_v4 = vpop.eup %1083  ;;  %1087 = vrcp.f32 %v462_v3  ;;  %v469_v5 = vsel %vm206_vm8, %v1345_v63, 0.0  ;;  %v426_v7 = vpop.xlane.xlu1 %425 }
 0x395   :  { %v489_v8 = vmul.f32 %v1084_v4, %v1076_v39  ;;  %1089 = vpow2.f32 %v447_v1  ;;  %470 = vadd.xlane.f32.xlu2 %v469_v5  ;;  %v438_v9 = vsub.f32 %v406_v45, %v426_v7  ;;  %v1086_v14 = vpop.eup %1085 }
 0x396   :  { %v463_v21 = vsel %vm206_vm8, %v1086_v14, 0.0 }
 0x397   :  { %v497_v11 = vpack.c.bf16 %v489_v8, %v489_v8  ;;  %v451_v12 = vmul.f32 1.442695, %v438_v9 }
 0x398   :  { %v570_v13 = vpop.permute.xlu2 %569 }
 0x399   :  { %v575_v15 = vsel %vm510_vm9, %v570_v13, 0  ;;  %964 = vmatmul.msk.bf16.vlgmr.msra.gmra.mxu1 %vm206_vm8, %v497_v11  ;;  %1091 = vpow2.f32 %v451_v12 }
 0x39a   :  { %v1088_v18 = vpop.eup %1087  ;;  %584 = vmatpush.bf16.msrb.mxu0 %v575_v15 }
 0x39b   :  { %v1090_v19 = vpop.eup %1089  ;;  %v490_v20 = vmul.f32 %v1088_v18, %v1078_v46 }
 0x39c   :  { %v466_v22 = vsel %vm206_vm8, %v1090_v19, 0.0  ;;  %v432_v23 = vpop.xlane.xlu1 %431 }
 0x39d   :  { %v498_v24 = vpack.c.bf16 %v490_v20, %v490_v20  ;;  %464 = vadd.xlane.f32.xlu2 %v463_v21  ;;  %467 = vadd.xlane.f32.xlu0 %v466_v22  ;;  %v440_v26 = vsub.f32 %v408_v49, %v432_v23  ;;  %v1025_v21 = vld [vmem:[%s1463_s4 + $0x8] sm:$0xff]  ;;  %v1024_v22 = vld [vmem:[%s1463_s4] sm:$0xff] }
 0x39f   :  { %v455_v27 = vmul.f32 1.442695, %v440_v26  ;;  %965 = vmatmul.msk.bf16.vlgmr.msra.gmra.mxu2 %vm206_vm8, %v498_v24  ;;  %v1092_v28 = vpop.eup %1091 }
 0x3a0   :  { %v472_v29 = vsel %vm206_vm8, %v1092_v28, 0.0 }
 0x3a1   :  { %1093 = vpow2.f32 %v455_v27 }
 0x3a5   :  { %473 = vadd.xlane.f32.xlu0 %v472_v29 }
 0x3a7   :  { %v1094_v31 = vpop.eup %1093 }
 0x3a8   :  { %v478_v32 = vsel %vm206_vm8, %v1094_v31, 0.0 }
 0x3ab   :  { %653 = vrot.lane.b32.xlu1 %v1286_v30, %s1142_s15 }
 0x3ad   :  { %479 = vadd.xlane.f32.xlu0 %v478_v32 }
 0x3b4   :  { %v612_v33 = vpop.permute.xlu1 %611 }
 0x3b5   :  { %632 = vrot.lane.b32.xlu2 %v1265_v16, %s1142_s15  ;;  %v617_v34 = vsel %vm510_vm9, %v612_v33, 0 }
 0x3b6   :  { %626 = vmatpush.bf16.msrb.mxu2 %v617_v34 }
 0x3c1   :  { %590 = vrot.lane.b32.xlu0 %v1267_v17, %s1142_s15 }
 0x405   :  { %v477_v38 = vpop.xlane.xlu1 %476 }
 0x408   :  { %v471_v35 = vpop.xlane.xlu2 %470 }
 0x410   :  { %v468_v36 = vpop.xlane.xlu0 %467  ;;  %v465_v37 = vpop.xlane.xlu2 %464 }
 0x411   :  { %1095 = vrcp.f32 %v468_v36 }
 0x412   :  { %1097 = vrcp.f32 %v465_v37 }
 0x416   :  { %v1363_v30 = vpop.f32.mrf.mxu1 }
 0x417   :  { %v1096_v39 = vpop.eup %1095 }
 0x418   :  { %v1098_v40 = vpop.eup %1097  ;;  %v492_v41 = vmul.f32 %v1096_v39, %v1090_v19  ;;  %v633_v42 = vpop.permute.xlu2 %632 }
 0x419   :  { %v474_v43 = vpop.xlane.xlu0 %473  ;;  %v491_v16 = vmul.f32 %v1098_v40, %v1086_v14  ;;  %v638_v44 = vsel %vm510_vm9, %v633_v42, 0 }
 0x41a   :  { %1099 = vrcp.f32 %v474_v43  ;;  %v500_v45 = vpack.c.bf16 %v492_v41, %v492_v41  ;;  %647 = vmatpush.bf16.msrb.mxu3 %v638_v44 }
 0x41b   :  { %v499_v17 = vpack.c.bf16 %v491_v16, %v491_v16  ;;  %1101 = vrcp.f32 %v477_v38 }
 0x41c   :  { %967 = vmatmul.msk.bf16.vlgmr.msrb.gmra.mxu0 %vm206_vm8, %v500_v45 }
 0x41d   :  { %966 = vmatmul.msk.bf16.vlgmr.msra.gmra.mxu3 %vm206_vm8, %v499_v17  ;;  %v654_v46 = vpop.permute.xlu1 %653 }
 0x41e   :  { %v525_v47 = vpop.f32.mrf.mxu1  ;;  %v659_v48 = vsel %vm510_vm9, %v654_v46, 0 }
 0x41f   :  { %668 = vmatpush.bf16.msra.mxu0 %v659_v48 }
 0x420   :  { %v1100_v49 = vpop.eup %1099 }
 0x421   :  { %v494_v50 = vmul.f32 %v1100_v49, %v1092_v28  ;;  %v480_v51 = vpop.xlane.xlu0 %479  ;;  %v1102_v54 = vpop.eup %1101 }
 0x422   :  { %1103 = vrcp.f32 %v480_v51  ;;  %v544_v53 = vpop.f32.mrf.mxu2  ;;  %v495_v56 = vmul.f32 %v1102_v54, %v1341_v61 }
 0x423   :  { %v502_v52 = vpack.c.bf16 %v494_v50, %v494_v50  ;;  %1105 = vrcp.f32 %v471_v35 }
 0x424   :  { %v503_v60 = vpack.c.bf16 %v495_v56, %v495_v56 }
 0x425   :  { %969 = vmatmul.msk.bf16.vlgmr.msrb.gmra.mxu2 %vm206_vm8, %v502_v52 }
 0x428   :  { %v1104_v55 = vpop.eup %1103 }
 0x429   :  { %v496_v57 = vmul.f32 %v1104_v55, %v1094_v31  ;;  %v1106_v62 = vpop.eup %1105  ;;  %v1027_v55 = vld [vmem:[%s1467_s8 + $0x8] sm:$0xff] }
 0x42a   :  { %v546_v59 = vpop.f32.mrf.mxu2  ;;  %v493_v6 = vmul.f32 %v1106_v62, %v1345_v63  ;;  %832 = vmatpush.bf16.msra.mxu2 %v1027_v55 }
 0x42b   :  { %v504_v58 = vpack.c.bf16 %v496_v57, %v496_v57 }
 0x42c   :  { %v501_v3 = vpack.c.bf16 %v493_v6, %v493_v6 }
 0x42d   :  { %971 = vmatmul.msk.bf16.vlgmr.msra.gmra.mxu0 %vm206_vm8, %v504_v58  ;;  %970 = vmatmul.msk.bf16.vlgmr.msrb.gmra.mxu3 %vm206_vm8, %v503_v60  ;;  %v1026_v58 = vld [vmem:[%s1467_s8] sm:$0xff]  ;;  %v1035_v60 = vld [vmem:[%s1469_s10 + $0x38] sm:$0xff] }
 0x42e   :  { %833 = vmatpush.bf16.msra.mxu2 %v1026_v58  ;;  %911 = vmatpush.bf16.msra.mxu3 %v1035_v60 }
 0x433   :  { %v591_v25 = vpop.permute.xlu0 %590 }
 0x434   :  { %v596_v1 = vsel %vm510_vm9, %v591_v25, 0  ;;  %v1034_v25 = vld [vmem:[%s1469_s10 + $0x30] sm:$0xff] }
 0x435   :  { %605 = vmatpush.bf16.msrb.mxu1 %v596_v1  ;;  %912 = vmatpush.bf16.msra.mxu3 %v1034_v25 }
 0x438   :  { %968 = vmatmul.msk.bf16.vlgmr.msrb.gmra.mxu1 %vm206_vm8, %v501_v3 }
 0x439   :  { %736 = vmatpush.bf16.msra.mxu1 %v1025_v21 }
 0x43d   :  { %737 = vmatpush.bf16.msra.mxu1 %v1024_v22  ;;  %v1066_v22 = vld [vmem:[%s1466_s7] ss:$0 sm:$0xff] }
 0x499   :  { %v586_v61 = vpop.f32.mrf.mxu0 }
 0x4a0   :  { %v565_v4 = vpop.f32.mrf.mxu3 }
 0x4a1   :  { %v1047_v5 = vpack.i.bf16 %v586_v61, %v565_v4  ;;  %v588_v7 = vpop.f32.mrf.mxu0  ;;  %v1033_v4 = vld [vmem:[%s1469_s10 + $0x28] sm:$0xff] }
 0x4a2   :  { %913 = vmatpush.bf16.msra.mxu3 %v1033_v4 }
 0x4a3   :  { %1048 = vrot.lane.b32.xlu0 %v1047_v5, %s1143_s16 }
 0x4a8   :  { %v628_v8 = vpop.f32.mrf.mxu2  ;;  %v567_v9 = vpop.f32.mrf.mxu3 }
 0x4aa   :  { %v670_v11 = vpop.f32.mrf.mxu0 }
 0x4b0   :  { %v630_v12 = vpop.f32.mrf.mxu2  ;;  %v649_v13 = vpop.f32.mrf.mxu3 }
 0x4b1   :  { %v1057_v63 = vpack.i.bf16 %v670_v11, %v649_v13 }
 0x4b2   :  { %v672_v14 = vpop.f32.mrf.mxu0 }
 0x4b3   :  { %1058 = vrot.lane.b32.xlu1 %v1057_v63, %s1144_s17 }
 0x4b5   :  { %v607_v15 = vpop.f32.mrf.mxu1 }
 0x4b6   :  { %v1052_v18 = vpack.i.bf16 %v628_v8, %v607_v15 }
 0x4b8   :  { %v651_v19 = vpop.f32.mrf.mxu3  ;;  %1053 = vrot.lane.b32.xlu2 %v1052_v18, %s1145_s18  ;;  %v1065_v18 = vld [vmem:[%s1465_s6] ss:$0 sm:$0xff] }
 0x4bd   :  { %v609_v20 = vpop.f32.mrf.mxu1 }
 0x512   :  { %v1054_v27 = vpop.permute.xlu2 %1053 }
 0x513   :  { %v1056_v31 = vunpack.i.h.bf16 %v1054_v27  ;;  %v1055_v32 = vunpack.i.l.bf16 %v1054_v27 }
 0x515   :  { %v1049_v23 = vpop.permute.xlu0 %1048 }
 0x516   :  { %v1051_v24 = vunpack.i.h.bf16 %v1049_v23  ;;  %v1050_v26 = vunpack.i.l.bf16 %v1049_v23 }
 0x518   :  { %v698_v28 = vsel %vm206_vm8, %v1363_v30, %v1050_v26  ;;  %v699_v29 = vsel %vm206_vm8, %v544_v53, %v1051_v24  ;;  %v1064_v30 = vld [vmem:[%s1464_s5] ss:$0 sm:$0xff] }
 0x519   :  { %v701_v36 = vsel %vm700_vm11, %v698_v28, %v1055_v32  ;;  %v702_v37 = vsel %vm700_vm11, %v699_v29, %v1056_v31  ;;  %v1031_v31 = vld [vmem:[%s1469_s10 + $0x18] sm:$0xff]  ;;  %v1030_v32 = vld [vmem:[%s1469_s10 + $0x10] sm:$0xff] }
 0x525   :  { %v1059_v33 = vpop.permute.xlu1 %1058 }
 0x526   :  { %v1061_v34 = vunpack.i.h.bf16 %v1059_v33  ;;  %v1060_v35 = vunpack.i.l.bf16 %v1059_v33  ;;  %v1029_v33 = vld [vmem:[%s1469_s10 + $0x8] sm:$0xff] }
 0x528   :  { %v704_v38 = vsel %vm703_vm12, %v701_v36, %v1060_v35  ;;  %v705_v39 = vsel %vm703_vm12, %v702_v37, %v1061_v34  ;;  %v1028_v34 = vld [vmem:[%s1469_s10] sm:$0xff] }
 0x529   :  { %v706_v40 = vpack.c.bf16 %v705_v39, %v704_v38  ;;  %v1067_v36 = vld [vmem:[%s1468_s9] ss:$0 sm:$0xff] }
 0x52b   :  { %980 = vmatmul.msk.bf16.vlgmr.msra.gmra.mxu1 %vm47_vm0, %v706_v40 }
 0x5a8   :  { %v739_v41 = vpop.f32.mrf.mxu1 }
 0x5a9   :  { %v740_v42 = vadd.f32 %v1064_v30, %v739_v41 }
 0x5ab   :  { %v1391_v43 = vadd.f32 %v740_v42, %v1216_v0  ;;  %v1068_v42 = vld [vmem:[%s1470_s11] ss:$0 sm:$0xff]  ;;  %s1147_s11 = smov 128  }
 0x5ad   :  { %v748_v16 = vsel %vm47_vm0, %v1391_v43, 0.0 }
 0x5ae   :  { %749 = vadd.xlane.f32.xlu0 %v748_v16 }
 0x5b0   :  { %v741_v44 = vpop.f32.mrf.mxu1 }
 0x5b1   :  { %v742_v45 = vadd.f32 %v1064_v30, %v741_v44 }
 0x5b3   :  { %v1396_v17 = vadd.f32 %v742_v45, %v1223_v2 }
 0x5b5   :  { %v751_v46 = vsel %vm47_vm0, %v1396_v17, 0.0 }
 0x5b6   :  { %752 = vadd.xlane.f32.xlu2 %v751_v46 }
 0x621   :  { %v750_v47 = vpop.xlane.xlu0 %749 }
 0x622   :  { %v754_v48 = vmul.f32 %v750_v47, %v1227_v10 }
 0x624   :  { %v756_v49 = vsub.f32 %v1391_v43, %v754_v48 }
 0x626   :  { %v758_v0 = vmul.f32 %v756_v49, %v756_v49 }
 0x628   :  { %v760_v50 = vsel %vm47_vm0, %v758_v0, 0.0 }
 0x629   :  { %v753_v51 = vpop.xlane.xlu2 %752  ;;  %761 = vadd.xlane.f32.xlu1 %v760_v50 }
 0x62a   :  { %v755_v52 = vmul.f32 %v753_v51, %v1227_v10 }
 0x62c   :  { %v757_v53 = vsub.f32 %v1396_v17, %v755_v52 }
 0x62e   :  { %v759_v2 = vmul.f32 %v757_v53, %v757_v53 }
 0x630   :  { %v763_v54 = vsel %vm47_vm0, %v759_v2, 0.0 }
 0x631   :  { %764 = vadd.xlane.f32.xlu0 %v763_v54 }
 0x69c   :  { %v762_v56 = vpop.xlane.xlu1 %761 }
 0x69d   :  { %v766_v57 = vmul.f32 %v762_v56, %v1227_v10 }
 0x69f   :  { %v768_v59 = vadd.f32 1e-05, %v766_v57 }
 0x6a1   :  { %1107 = vrsqrt.f32 %v768_v59  ;;  %vm776_vm14 = vweird.f32 %v768_v59 }
 0x6a4   :  { %v765_v62 = vpop.xlane.xlu0 %764 }
 0x6a5   :  { %v767_v6 = vmul.f32 %v765_v62, %v1227_v10  ;;  %v1032_v10 = vld [vmem:[%s1469_s10 + $0x20] sm:$0xff]  ;;  %s1146_s10 = smov [#allocation2]  }
 0x6a6   :  { %914 = vmatpush.bf16.msra.mxu3 %v1032_v10  ;;  %s933_s0 = sshll.u32 %s1146_s10, 4  ;;  %s934_s0 = int_to_ptr.vmem [resolvable:$true] %s933_s0 }
 0x6a7   :  { %v1108_v1 = vpop.eup %1107  ;;  %v769_v3 = vadd.f32 1e-05, %v767_v6 }
 0x6a8   :  { %v771_v61 = vmul.f32 %v1108_v1, %v768_v59  ;;  %vm777_vm13 = vweird.f32 %v1108_v1 }
 0x6a9   :  { %1109 = vrsqrt.f32 %v769_v3  ;;  %vm778_vm15 = vmor %vm776_vm14, %vm777_vm13  ;;  %vm786_vm2 = vweird.f32 %v769_v3 }
 0x6aa   :  { %v772_v5 = vmul.f32 %v1108_v1, %v771_v61  ;;  %915 = vmatpush.bf16.msra.mxu3 %v1031_v31 }
 0x6ac   :  { %v773_v7 = vmul.f32 0.5, %v772_v5 }
 0x6ae   :  { %v774_v8 = vsub.f32 1.5, %v773_v7  ;;  %916 = vmatpush.bf16.msra.mxu3 %v1030_v32 }
 0x6af   :  { %v1110_v9 = vpop.eup %1109 }
 0x6b0   :  { %v775_v11 = vmul.f32 %v1108_v1, %v774_v8  ;;  %v781_v12 = vmul.f32 %v1110_v9, %v769_v3  ;;  %vm787_vm1 = vweird.f32 %v1110_v9 }
 0x6b1   :  { %vm788_vm3 = vmor %vm786_vm2, %vm787_vm1 }
 0x6b2   :  { %v782_v13 = vmul.f32 %v1110_v9, %v781_v12  ;;  %v779_v63 = vsel %vm778_vm15, %v1108_v1, %v775_v11  ;;  %917 = vmatpush.bf16.msra.mxu3 %v1029_v33 }
 0x6b3   :  { %v790_v19 = vmul.f32 %v779_v63, %v756_v49 }
 0x6b4   :  { %v783_v14 = vmul.f32 0.5, %v782_v13 }
 0x6b5   :  { %v795_v23 = vmul.f32 %v1065_v18, %v790_v19 }
 0x6b6   :  { %v784_v15 = vsub.f32 1.5, %v783_v14  ;;  %918 = vmatpush.bf16.msra.mxu3 %v1028_v34 }
 0x6b7   :  { %v800_v27 = vadd.f32 %v1066_v22, %v795_v23 }
 0x6b8   :  { %v785_v20 = vmul.f32 %v1110_v9, %v784_v15 }
 0x6ba   :  { %v789_v21 = vsel %vm788_vm3, %v1110_v9, %v785_v20 }
 0x6bb   :  { %v791_v24 = vmul.f32 %v789_v21, %v757_v53 }
 0x6bd   :  { %v796_v26 = vmul.f32 %v1065_v18, %v791_v24 }
 0x6bf   :  { %v801_v28 = vadd.f32 %v1066_v22, %v796_v26 }
 0x6c1   :  { %v802_v29 = vpack.c.bf16 %v801_v28, %v800_v27 }
 0x6c3   :  { %989 = vmatmul.msk.bf16.vlgmr.msra.gmra.mxu2 %vm47_vm0, %v802_v29 }
 0x746   :  { %v835_v35 = vpop.f32.mrf.mxu2 }
 0x747   :  { %v836_v37 = vadd.f32 %v1067_v36, %v835_v35 }
 0x749   :  { %v840_v40 = vmax.f32 %v836_v37, 0.0 }
 0x74e   :  { %v837_v38 = vpop.f32.mrf.mxu2 }
 0x74f   :  { %v838_v39 = vadd.f32 %v1067_v36, %v837_v38 }
 0x751   :  { %v841_v30 = vmax.f32 %v838_v39, 0.0 }
 0x753   :  { %v842_v41 = vpack.c.bf16 %v841_v30, %v840_v40 }
 0x755   :  { %919 = vmatmul.bf16.vlgmr.msra.gmra.mxu3 %v842_v41 }
 0x7d8   :  { %v920_v16 = vpop.f32.mrf.mxu3 }
 0x7d9   :  { %v921_v44 = vadd.f32 %v1068_v42, %v920_v16 }
 0x7db   :  { %v925_v45 = vadd.f32 %v921_v44, %v1391_v43 }
 0x7dd   :  { %927 = vst.msk [vmem:[#allocation2] sm:$0xff] %vm47_vm0, %v925_v45 }
 0x7e0   :  { %v922_v46 = vpop.f32.mrf.mxu3 }
 0x7e1   :  { %v923_v47 = vadd.f32 %v1068_v42, %v922_v46 }
 0x7e3   :  { %v926_v48 = vadd.f32 %v923_v47, %v1396_v17 }
 0x7e5   :  { %928 = vst.msk [vmem:[#allocation2 + $0x8] sm:$0xff] %vm47_vm0, %v926_v48 }
 0x7e6   :  { %941 = dma.vmem_to_hbm [thread:$0]  %s934_s0, 256, %s936_s26, [#allocation3], %s1147_s11, %s1147_s11, %s1143_s16  }
 0x7e7   :  { %1135 = dma.done.wait [#allocation3], 256  }
 0x7e8   :  { %1136 = vsyncadd [#allocation3], 4294967040 }
 0x7e9   :  { %946 = vsyncpa [#allocation3], 1 }

</bundles_post_ra>
